<compile_context>
chip_gen: v7x
topology: tpu7x:2x2x1
jax: 0.10.0
libtpu: 0.0.40
codegen_flags: <defaults>
</compile_context>

<pallas_src>
import functools
import math

import jax
import jax.numpy as jnp
from jax import lax
from jax.experimental import pallas as pl
from jax.experimental.pallas import tpu as pltpu

_EPS = 1e-5  # PyTorch BatchNorm2d default eps


# ----------------------------- Pallas kernel ------------------------------- #

def _conv3x3_bn_kernel(stride, shortcut_mode, apply_relu, th, wout, *refs):
    """Fused 3x3 conv + folded BN [+ shortcut] [+ ReLU] for one (batch, row-tile).

    refs (in order):
      x_ref     : padded input window
                  stride 1: (th+2, W+2, Cin)
                  stride 2: (th+1, 2, W/2+1, 2*Cin) pair layout, where
                            x_ref[q, a, p, b*Cin + c] == padded_x[2q+a, 2p+b, c]
      w_ref     : (9*Cin, Cout) conv weight, rows ordered (kh*3 + kw)*Cin + c
      scale_ref : (1, Cout) folded BN scale;  bias_ref: (1, Cout) folded BN bias
      [sc_ref]  : (th*Wout, Csc) shortcut tile (bf16 if projected, f32 identity)
      [scw/scs/scb] : 1x1 shortcut weight (Csc, Cout) + folded BN (project mode)
      out_ref   : (th*Wout, Cout)
      patch_ref : VMEM scratch (th*Wout, 9*Cin) bf16 (in-kernel im2col)
    """
    if shortcut_mode == "project":
        (x_ref, w_ref, scale_ref, bias_ref,
         sc_ref, scw_ref, scs_ref, scb_ref, out_ref, patch_ref) = refs
    elif shortcut_mode == "identity":
        x_ref, w_ref, scale_ref, bias_ref, sc_ref, out_ref, patch_ref = refs
    else:
        x_ref, w_ref, scale_ref, bias_ref, out_ref, patch_ref = refs

    # ---- in-kernel im2col: copy the 9 stencil taps of the padded window into
    # the (th*Wout, 9*Cin) VMEM scratch using static ref slices only ----------
    if stride == 1:
        cin = x_ref.shape[-1]
        k = 0
        for kh in range(3):
            for kw in range(3):
                for r in range(th):
                    patch_ref[r * wout:(r + 1) * wout, k * cin:(k + 1) * cin] = (
                        x_ref[r + kh, kw:kw + wout, :])
                k += 1
    else:  # stride 2, pair layout
        cin = x_ref.shape[-1] // 2
        # per kh: (row-pair offset dq, intra-pair row a); per kw: (col slice, chan slice)
        taps = []
        for dq, a in ((0, 0), (0, 1), (1, 0)):            # kh = 0, 1, 2
            taps.append((dq, a, 0, wout, 0, cin))          # kw = 0
            taps.append((dq, a, 0, wout, cin, 2 * cin))    # kw = 1
            taps.append((dq, a, 1, wout + 1, 0, cin))      # kw = 2
        for k, (dq, a, c0, c1, d0, d1) in enumerate(taps):
            for r in range(th):
                patch_ref[r * wout:(r + 1) * wout, k * cin:(k + 1) * cin] = (
                    x_ref[r + dq, a, c0:c1, d0:d1])

    # ---- one MXU contraction with K = 9*Cin, f32 accumulation ---------------
    acc = jnp.dot(patch_ref[...], w_ref[...], preferred_element_type=jnp.float32)
    y = acc * scale_ref[...] + bias_ref[...]               # folded BN (f32)

    if shortcut_mode == "project":
        sc = jnp.dot(sc_ref[...], scw_ref[...], preferred_element_type=jnp.float32)
        y = y + (sc * scs_ref[...] + scb_ref[...])
    elif shortcut_mode == "identity":
        y = y + sc_ref[...]

    if apply_relu:
        y = jnp.maximum(y, 0.0)
    out_ref[...] = y.astype(out_ref.dtype)


# ------------------------------ kernel wrapper ------------------------------ #

def _largest_divisor_leq(n, cap):
    cap = max(1, min(cap, n))
    for d in range(cap, 0, -1):
        if n % d == 0:
            return d
    return 1


def _row_tile(hout, wout):
    """Output rows per tile: ~512 matmul rows, >=2 spatial tiles when possible
    (feeds both v7x TensorCores), bounded unroll, sublane-aligned blocks."""
    cap = max(1, 512 // max(wout, 1))
    cap = min(cap, max(hout // 2, 1))
    cap = min(cap, 16)
    th = _largest_divisor_leq(hout, cap)
    if (th * wout) % 8 != 0 and th != hout:
        th = hout  # full-extent block satisfies the (8, 128) block rule
    return th


def conv3x3_bn(x, w, scale, bias, *, stride, relu,
               residual=None, sc_w=None, sc_scale=None, sc_bias=None,
               out_dtype=jnp.float32):
    """3x3 conv (pad=1, stride 1|2) + folded BN [+ fused shortcut] [+ ReLU].

    x        : (N, H, W, Cin) NHWC.
    w        : (3, 3, Cin, Cout) HWIO.
    residual : identity residual (N, Hout, Wout, Cout) if sc_w is None, else
               the strided shortcut input (N, Hout, Wout, Csc) which gets a
               fused 1x1 conv (sc_w: (Csc, Cout)) + folded BN (sc_scale/sc_bias).
    Returns (N, Hout, Wout, Cout) in out_dtype.
    """
    n, h, wd, cin = x.shape
    cout = w.shape[-1]
    assert stride in (1, 2)
    if stride == 2:
        # TODO(synk): the pair-layout stride-2 path assumes even H and W
        # (true for CIFAR/ImageNet ResNets); odd sizes would need extra padding.
        assert h % 2 == 0 and wd % 2 == 0
    hout, wout = h // stride, wd // stride
    th = _row_tile(hout, wout)
    nt = hout // th

    # One zero-padded copy of the input; each grid step only DMAs its own row
    # window (2-row halo duplication), NOT a 9x im2col blowup.
    xb = x.astype(jnp.bfloat16)
    xp = jnp.pad(xb, ((0, 0), (1, 1), (1, 1), (0, 0)))
    if stride == 1:
        win = jnp.stack([xp[:, j * th: j * th + th + 2] for j in range(nt)], axis=1)
        win_block = (th + 2, wd + 2, cin)
    else:
        # free row-major reshape: [n, 2q+a, 2p+b, c] -> [n, q, a, p, b*cin + c]
        xpp = xp.reshape(n, (h + 2) // 2, 2, (wd + 2) // 2, 2 * cin)
        win = jnp.stack([xpp[:, j * th: j * th + th + 1] for j in range(nt)], axis=1)
        win_block = (th + 1, 2, (wd + 2) // 2, 2 * cin)

    w9 = w.reshape(9 * cin, cout).astype(jnp.bfloat16)
    scale2 = scale.reshape(1, cout).astype(jnp.float32)
    bias2 = bias.reshape(1, cout).astype(jnp.float32)

    nw = len(win_block)
    in_specs = [
        pl.BlockSpec((None, None) + win_block, lambda i, j: (i, j) + (0,) * nw),
        pl.BlockSpec((9 * cin, cout), lambda i, j: (0, 0)),
        pl.BlockSpec((1, cout), lambda i, j: (0, 0)),
        pl.BlockSpec((1, cout), lambda i, j: (0, 0)),
    ]
    args = [win, w9, scale2, bias2]

    if residual is None:
        mode = "none"
        csc = cin
    else:
        assert residual.shape[:3] == (n, hout, wout), residual.shape
        csc = residual.shape[-1]
        res3 = residual.reshape(n, hout * wout, csc)
        in_specs.append(pl.BlockSpec((None, th * wout, csc), lambda i, j: (i, j, 0)))
        if sc_w is None:
            mode = "identity"
            assert csc == cout
            args.append(res3.astype(jnp.float32))
        else:
            mode = "project"
            args.append(res3.astype(jnp.bfloat16))
            in_specs.append(pl.BlockSpec((csc, cout), lambda i, j: (0, 0)))
            args.append(sc_w.astype(jnp.bfloat16))
            in_specs.append(pl.BlockSpec((1, cout), lambda i, j: (0, 0)))
            args.append(sc_scale.reshape(1, cout).astype(jnp.float32))
            in_specs.append(pl.BlockSpec((1, cout), lambda i, j: (0, 0)))
            args.append(sc_bias.reshape(1, cout).astype(jnp.float32))

    # VMEM budget: double-buffered blocks stay well under v7x's 64 MiB.
    blk_bytes = (math.prod(win_block) * 2
                 + th * wout * 9 * cin * 2
                 + th * wout * cout * 4
                 + th * wout * csc * 4
                 + 9 * cin * cout * 2)
    vmem_limit = int(min(48 << 20, max(16 << 20, 4 * blk_bytes)))

    kernel = functools.partial(_conv3x3_bn_kernel, stride, mode, relu, th, wout)
    out = pl.pallas_call(
        kernel,
        out_shape=jax.ShapeDtypeStruct((n, hout * wout, cout), out_dtype),
        grid=(n, nt),
        in_specs=in_specs,
        out_specs=pl.BlockSpec((None, th * wout, cout), lambda i, j: (i, j, 0)),
        scratch_shapes=[pltpu.VMEM((th * wout, 9 * cin), jnp.bfloat16)],
        compiler_params=pltpu.CompilerParams(
            dimension_semantics=("parallel", "parallel"),
            vmem_limit_bytes=vmem_limit),
    )(*args)
    return out.reshape(n, hout, wout, cout)


# ------------------------------ BasicBlock glue ----------------------------- #

def _fold_bn(gamma, beta, mean, var):
    scale = gamma / jnp.sqrt(var + _EPS)
    bias = beta - mean * scale
    return scale, bias


def init_basic_block_params(key, in_planes, planes, stride):
    ks = jax.random.split(key, 15)

    def conv_w(k, kh, kw, cin, cout):
        # PyTorch layout (Cout, Cin, kh, kw) -> kernel layout (kh, kw, Cin, Cout)
        w = 0.1 * jax.random.normal(k, (cout, cin, kh, kw), jnp.float32)
        return jnp.transpose(w, (2, 3, 1, 0))

    def bn_p(k1, k2, k3, k4, c):
        gamma = jax.random.uniform(k1, (c,), jnp.float32, 0.5, 1.5)
        beta = 0.1 * jax.random.normal(k2, (c,), jnp.float32)
        mean = 0.1 * jax.random.normal(k3, (c,), jnp.float32)
        var = jax.random.uniform(k4, (c,), jnp.float32, 0.5, 1.5)
        return gamma, beta, mean, var

    params = {
        "conv1_w": conv_w(ks[0], 3, 3, in_planes, planes),
        "bn1": bn_p(ks[1], ks[2], ks[3], ks[4], planes),
        "conv2_w": conv_w(ks[5], 3, 3, planes, planes),
        "bn2": bn_p(ks[6], ks[7], ks[8], ks[9], planes),
    }
    if stride != 1 or in_planes != planes:
        params["conv_sc_w"] = conv_w(ks[10], 1, 1, in_planes, planes)[0, 0]
        params["bn_sc"] = bn_p(ks[11], ks[12], ks[13], ks[14], planes)
    return params


def basic_block_forward(x_nchw, params, stride):
    """Forward of the PyTorch BasicBlock (eval-mode BN). Input/output are NCHW."""
    x = jnp.transpose(x_nchw, (0, 2, 3, 1)).astype(jnp.float32)  # -> NHWC

    s1, b1 = _fold_bn(*params["bn1"])
    s2, b2 = _fold_bn(*params["bn2"])

    # conv1 (stride s) + bn1 + relu; strided output computed directly in-kernel.
    out1 = conv3x3_bn(x, params["conv1_w"], s1, b1, stride=stride, relu=True,
                      out_dtype=jnp.bfloat16)

    # conv2 + bn2 + shortcut (fused 1x1 conv + bn if projecting) + add + relu,
    # all in one Pallas kernel.
    if "conv_sc_w" in params:
        ssc, bsc = _fold_bn(*params["bn_sc"])
        xs = x[:, ::stride, ::stride, :]        # 1x1-conv input at strided positions
        out = conv3x3_bn(out1, params["conv2_w"], s2, b2, stride=1, relu=True,
                         residual=xs, sc_w=params["conv_sc_w"],
                         sc_scale=ssc, sc_bias=bsc, out_dtype=jnp.float32)
    else:
        out = conv3x3_bn(out1, params["conv2_w"], s2, b2, stride=1, relu=True,
                         residual=x, out_dtype=jnp.float32)
    return jnp.transpose(out, (0, 3, 1, 2))     # -> NCHW


# ------------------------------ pure-JAX reference -------------------------- #

def _ref_forward(x_nchw, params, stride):
    """Reference mirroring the kernel's bf16-operand / f32-accumulation math."""
    x = jnp.transpose(x_nchw, (0, 2, 3, 1)).astype(jnp.float32)

    def conv(v, w, s, pad):
        return lax.conv_general_dilated(
            v.astype(jnp.bfloat16), w.astype(jnp.bfloat16), (s, s),
            [(pad, pad), (pad, pad)],
            dimension_numbers=("NHWC", "HWIO", "NHWC"),
            preferred_element_type=jnp.float32)

    def bn(v, p):
        g, b, m, var = p
        return (v - m) / jnp.sqrt(var + _EPS) * g + b

    out = jax.nn.relu(bn(conv(x, params["conv1_w"], stride, 1), params["bn1"]))
    out = bn(conv(out, params["conv2_w"], 1, 1), params["bn2"])
    if "conv_sc_w" in params:
        w = params["conv_sc_w"][None, None]     # (1, 1, Cin, Cout)
        sc = bn(conv(x, w, stride, 0), params["bn_sc"])
    else:
        sc = x
    out = jax.nn.relu(out + sc)
    return jnp.transpose(out, (0, 3, 1, 2))


# ----------------------------------- main ----------------------------------- #

if __name__ == "__main__":
    def _check(n, in_planes, planes, h, w, stride):
        key = jax.random.PRNGKey(0)
        k_x, k_p = jax.random.split(key)
        x = jax.random.normal(k_x, (n, in_planes, h, w), jnp.float32)  # NCHW
        params = init_basic_block_params(k_p, in_planes, planes, stride)

        out = jax.block_until_ready(basic_block_forward(x, params, stride))
        assert out.shape == (n, planes, h // stride, w // stride), out.shape

        ref = _ref_forward(x, params, stride)
        err = float(jnp.max(jnp.abs(out - ref)))
        assert err < 2e-2, f"mismatch vs reference: {err}"

    _check(2, 4, 8, 16, 16, stride=2)   # down-sampling block (projection shortcut)
    _check(2, 8, 8, 16, 16, stride=1)   # identity-shortcut block
    print("KERNEL_OK")
</pallas_src>

<mosaic_0001>
module attributes {stable_mosaic.version = 11 : i64} {
  func.func @_conv3x3_bn_kernel(%arg0: i32, %arg1: i32, %arg2: memref<1x1x5x2x9x8xbf16, #tpu.memory_space<vmem>>, %arg3: memref<36x8xbf16, #tpu.memory_space<vmem>>, %arg4: memref<1x8xf32, #tpu.memory_space<vmem>>, %arg5: memref<1x8xf32, #tpu.memory_space<vmem>>, %arg6: memref<1x32x8xbf16, #tpu.memory_space<vmem>>, %arg7: memref<32x36xbf16, #tpu.memory_space<vmem>>) attributes {dimension_semantics = [#tpu.dimension_semantics<parallel>, #tpu.dimension_semantics<parallel>], iteration_bounds = array<i64: 2, 2>, scalar_prefetch = 0 : i64, scratch_operands = 1 : i64, tpu.core_type = #tpu.core_type<tc>, window_params = [{transform_indices = @transform_0, window_bounds = array<i64: 1, 1, 5, 2, 9, 8>}, {pipeline_mode = #tpu.pipeline_mode<synchronous>, transform_indices = @transform_1, window_bounds = array<i64: 36, 8>}, {pipeline_mode = #tpu.pipeline_mode<synchronous>, transform_indices = @transform_2, window_bounds = array<i64: 1, 8>}, {pipeline_mode = #tpu.pipeline_mode<synchronous>, transform_indices = @transform_3, window_bounds = array<i64: 1, 8>}, {transform_indices = @transform_4, window_bounds = array<i64: 1, 32, 8>}]} {
    %c0 = arith.constant 0 : index
    %c0_0 = arith.constant 0 : index
    %c0_1 = arith.constant 0 : index
    %c0_2 = arith.constant 0 : index
    %c0_3 = arith.constant 0 : index
    %c0_4 = arith.constant 0 : index
    %0 = vector.load %arg2[%c0, %c0_0, %c0_1, %c0_2, %c0_3, %c0_4] : memref<1x1x5x2x9x8xbf16, #tpu.memory_space<vmem>>, vector<1x1x1x1x8x4xbf16>
    %1 = vector.shape_cast %0 : vector<1x1x1x1x8x4xbf16> to vector<8x4xbf16>
    %c0_5 = arith.constant 0 : index
    %c0_6 = arith.constant 0 : index
    %2 = vector.load %arg7[%c0_5, %c0_6] : memref<32x36xbf16, #tpu.memory_space<vmem>>, vector<8x4xbf16>
    tpu.vector_store %arg7[%c0_5, %c0_6], %1 {strides = array<i32>} : memref<32x36xbf16, #tpu.memory_space<vmem>>, vector<8x4xbf16>,
    %c0_7 = arith.constant 0 : index
    %c0_8 = arith.constant 0 : index
    %c1 = arith.constant 1 : index
    %c0_9 = arith.constant 0 : index
    %c0_10 = arith.constant 0 : index
    %c0_11 = arith.constant 0 : index
    %3 = vector.load %arg2[%c0_7, %c0_8, %c1, %c0_9, %c0_10, %c0_11] : memref<1x1x5x2x9x8xbf16, #tpu.memory_space<vmem>>, vector<1x1x1x1x8x4xbf16>
    %4 = vector.shape_cast %3 : vector<1x1x1x1x8x4xbf16> to vector<8x4xbf16>
    %c8 = arith.constant 8 : index
    %c0_12 = arith.constant 0 : index
    %5 = vector.load %arg7[%c8, %c0_12] : memref<32x36xbf16, #tpu.memory_space<vmem>>, vector<8x4xbf16>
    tpu.vector_store %arg7[%c8, %c0_12], %4 {strides = array<i32>} : memref<32x36xbf16, #tpu.memory_space<vmem>>, vector<8x4xbf16>,
    %c0_13 = arith.constant 0 : index
    %c0_14 = arith.constant 0 : index
    %c2 = arith.constant 2 : index
    %c0_15 = arith.constant 0 : index
    %c0_16 = arith.constant 0 : index
    %c0_17 = arith.constant 0 : index
    %6 = vector.load %arg2[%c0_13, %c0_14, %c2, %c0_15, %c0_16, %c0_17] : memref<1x1x5x2x9x8xbf16, #tpu.memory_space<vmem>>, vector<1x1x1x1x8x4xbf16>
    %7 = vector.shape_cast %6 : vector<1x1x1x1x8x4xbf16> to vector<8x4xbf16>
    %c16 = arith.constant 16 : index
    %c0_18 = arith.constant 0 : index
    %8 = vector.load %arg7[%c16, %c0_18] : memref<32x36xbf16, #tpu.memory_space<vmem>>, vector<8x4xbf16>
    tpu.vector_store %arg7[%c16, %c0_18], %7 {strides = array<i32>} : memref<32x36xbf16, #tpu.memory_space<vmem>>, vector<8x4xbf16>,
    %c0_19 = arith.constant 0 : index
    %c0_20 = arith.constant 0 : index
    %c3 = arith.constant 3 : index
    %c0_21 = arith.constant 0 : index
    %c0_22 = arith.constant 0 : index
    %c0_23 = arith.constant 0 : index
    %9 = vector.load %arg2[%c0_19, %c0_20, %c3, %c0_21, %c0_22, %c0_23] : memref<1x1x5x2x9x8xbf16, #tpu.memory_space<vmem>>, vector<1x1x1x1x8x4xbf16>
    %10 = vector.shape_cast %9 : vector<1x1x1x1x8x4xbf16> to vector<8x4xbf16>
    %c24 = arith.constant 24 : index
    %c0_24 = arith.constant 0 : index
    %11 = vector.load %arg7[%c24, %c0_24] : memref<32x36xbf16, #tpu.memory_space<vmem>>, vector<8x4xbf16>
    tpu.vector_store %arg7[%c24, %c0_24], %10 {strides = array<i32>} : memref<32x36xbf16, #tpu.memory_space<vmem>>, vector<8x4xbf16>,
    %c0_25 = arith.constant 0 : index
    %c0_26 = arith.constant 0 : index
    %c0_27 = arith.constant 0 : index
    %c0_28 = arith.constant 0 : index
    %c0_29 = arith.constant 0 : index
    %c4 = arith.constant 4 : index
    %12 = vector.load %arg2[%c0_25, %c0_26, %c0_27, %c0_28, %c0_29, %c4] : memref<1x1x5x2x9x8xbf16, #tpu.memory_space<vmem>>, vector<1x1x1x1x8x4xbf16>
    %13 = vector.shape_cast %12 : vector<1x1x1x1x8x4xbf16> to vector<8x4xbf16>
    %c0_30 = arith.constant 0 : index
    %c4_31 = arith.constant 4 : index
    %14 = vector.load %arg7[%c0_30, %c4_31] : memref<32x36xbf16, #tpu.memory_space<vmem>>, vector<8x4xbf16>
    tpu.vector_store %arg7[%c0_30, %c4_31], %13 {strides = array<i32>} : memref<32x36xbf16, #tpu.memory_space<vmem>>, vector<8x4xbf16>,
    %c0_32 = arith.constant 0 : index
    %c0_33 = arith.constant 0 : index
    %c1_34 = arith.constant 1 : index
    %c0_35 = arith.constant 0 : index
    %c0_36 = arith.constant 0 : index
    %c4_37 = arith.constant 4 : index
    %15 = vector.load %arg2[%c0_32, %c0_33, %c1_34, %c0_35, %c0_36, %c4_37] : memref<1x1x5x2x9x8xbf16, #tpu.memory_space<vmem>>, vector<1x1x1x1x8x4xbf16>
    %16 = vector.shape_cast %15 : vector<1x1x1x1x8x4xbf16> to vector<8x4xbf16>
    %c8_38 = arith.constant 8 : index
    %c4_39 = arith.constant 4 : index
    %17 = vector.load %arg7[%c8_38, %c4_39] : memref<32x36xbf16, #tpu.memory_space<vmem>>, vector<8x4xbf16>
    tpu.vector_store %arg7[%c8_38, %c4_39], %16 {strides = array<i32>} : memref<32x36xbf16, #tpu.memory_space<vmem>>, vector<8x4xbf16>,
    %c0_40 = arith.constant 0 : index
    %c0_41 = arith.constant 0 : index
    %c2_42 = arith.constant 2 : index
    %c0_43 = arith.constant 0 : index
    %c0_44 = arith.constant 0 : index
    %c4_45 = arith.constant 4 : index
    %18 = vector.load %arg2[%c0_40, %c0_41, %c2_42, %c0_43, %c0_44, %c4_45] : memref<1x1x5x2x9x8xbf16, #tpu.memory_space<vmem>>, vector<1x1x1x1x8x4xbf16>
    %19 = vector.shape_cast %18 : vector<1x1x1x1x8x4xbf16> to vector<8x4xbf16>
    %c16_46 = arith.constant 16 : index
    %c4_47 = arith.constant 4 : index
    %20 = vector.load %arg7[%c16_46, %c4_47] : memref<32x36xbf16, #tpu.memory_space<vmem>>, vector<8x4xbf16>
    tpu.vector_store %arg7[%c16_46, %c4_47], %19 {strides = array<i32>} : memref<32x36xbf16, #tpu.memory_space<vmem>>, vector<8x4xbf16>,
    %c0_48 = arith.constant 0 : index
    %c0_49 = arith.constant 0 : index
    %c3_50 = arith.constant 3 : index
    %c0_51 = arith.constant 0 : index
    %c0_52 = arith.constant 0 : index
    %c4_53 = arith.constant 4 : index
    %21 = vector.load %arg2[%c0_48, %c0_49, %c3_50, %c0_51, %c0_52, %c4_53] : memref<1x1x5x2x9x8xbf16, #tpu.memory_space<vmem>>, vector<1x1x1x1x8x4xbf16>
    %22 = vector.shape_cast %21 : vector<1x1x1x1x8x4xbf16> to vector<8x4xbf16>
    %c24_54 = arith.constant 24 : index
    %c4_55 = arith.constant 4 : index
    %23 = vector.load %arg7[%c24_54, %c4_55] : memref<32x36xbf16, #tpu.memory_space<vmem>>, vector<8x4xbf16>
    tpu.vector_store %arg7[%c24_54, %c4_55], %22 {strides = array<i32>} : memref<32x36xbf16, #tpu.memory_space<vmem>>, vector<8x4xbf16>,
    %c0_56 = arith.constant 0 : index
    %c0_57 = arith.constant 0 : index
    %c0_58 = arith.constant 0 : index
    %c0_59 = arith.constant 0 : index
    %c1_60 = arith.constant 1 : index
    %c0_61 = arith.constant 0 : index
    %24 = vector.load %arg2[%c0_56, %c0_57, %c0_58, %c0_59, %c1_60, %c0_61] : memref<1x1x5x2x9x8xbf16, #tpu.memory_space<vmem>>, vector<1x1x1x1x8x4xbf16>
    %25 = vector.shape_cast %24 : vector<1x1x1x1x8x4xbf16> to vector<8x4xbf16>
    %c0_62 = arith.constant 0 : index
    %c8_63 = arith.constant 8 : index
    %26 = vector.load %arg7[%c0_62, %c8_63] : memref<32x36xbf16, #tpu.memory_space<vmem>>, vector<8x4xbf16>
    tpu.vector_store %arg7[%c0_62, %c8_63], %25 {strides = array<i32>} : memref<32x36xbf16, #tpu.memory_space<vmem>>, vector<8x4xbf16>,
    %c0_64 = arith.constant 0 : index
    %c0_65 = arith.constant 0 : index
    %c1_66 = arith.constant 1 : index
    %c0_67 = arith.constant 0 : index
    %c1_68 = arith.constant 1 : index
    %c0_69 = arith.constant 0 : index
    %27 = vector.load %arg2[%c0_64, %c0_65, %c1_66, %c0_67, %c1_68, %c0_69] : memref<1x1x5x2x9x8xbf16, #tpu.memory_space<vmem>>, vector<1x1x1x1x8x4xbf16>
    %28 = vector.shape_cast %27 : vector<1x1x1x1x8x4xbf16> to vector<8x4xbf16>
    %c8_70 = arith.constant 8 : index
    %c8_71 = arith.constant 8 : index
    %29 = vector.load %arg7[%c8_70, %c8_71] : memref<32x36xbf16, #tpu.memory_space<vmem>>, vector<8x4xbf16>
    tpu.vector_store %arg7[%c8_70, %c8_71], %28 {strides = array<i32>} : memref<32x36xbf16, #tpu.memory_space<vmem>>, vector<8x4xbf16>,
    %c0_72 = arith.constant 0 : index
    %c0_73 = arith.constant 0 : index
    %c2_74 = arith.constant 2 : index
    %c0_75 = arith.constant 0 : index
    %c1_76 = arith.constant 1 : index
    %c0_77 = arith.constant 0 : index
    %30 = vector.load %arg2[%c0_72, %c0_73, %c2_74, %c0_75, %c1_76, %c0_77] : memref<1x1x5x2x9x8xbf16, #tpu.memory_space<vmem>>, vector<1x1x1x1x8x4xbf16>
    %31 = vector.shape_cast %30 : vector<1x1x1x1x8x4xbf16> to vector<8x4xbf16>
    %c16_78 = arith.constant 16 : index
    %c8_79 = arith.constant 8 : index
    %32 = vector.load %arg7[%c16_78, %c8_79] : memref<32x36xbf16, #tpu.memory_space<vmem>>, vector<8x4xbf16>
    tpu.vector_store %arg7[%c16_78, %c8_79], %31 {strides = array<i32>} : memref<32x36xbf16, #tpu.memory_space<vmem>>, vector<8x4xbf16>,
    %c0_80 = arith.constant 0 : index
    %c0_81 = arith.constant 0 : index
    %c3_82 = arith.constant 3 : index
    %c0_83 = arith.constant 0 : index
    %c1_84 = arith.constant 1 : index
    %c0_85 = arith.constant 0 : index
    %33 = vector.load %arg2[%c0_80, %c0_81, %c3_82, %c0_83, %c1_84, %c0_85] : memref<1x1x5x2x9x8xbf16, #tpu.memory_space<vmem>>, vector<1x1x1x1x8x4xbf16>
    %34 = vector.shape_cast %33 : vector<1x1x1x1x8x4xbf16> to vector<8x4xbf16>
    %c24_86 = arith.constant 24 : index
    %c8_87 = arith.constant 8 : index
    %35 = vector.load %arg7[%c24_86, %c8_87] : memref<32x36xbf16, #tpu.memory_space<vmem>>, vector<8x4xbf16>
    tpu.vector_store %arg7[%c24_86, %c8_87], %34 {strides = array<i32>} : memref<32x36xbf16, #tpu.memory_space<vmem>>, vector<8x4xbf16>,
    %c0_88 = arith.constant 0 : index
    %c0_89 = arith.constant 0 : index
    %c0_90 = arith.constant 0 : index
    %c1_91 = arith.constant 1 : index
    %c0_92 = arith.constant 0 : index
    %c0_93 = arith.constant 0 : index
    %36 = vector.load %arg2[%c0_88, %c0_89, %c0_90, %c1_91, %c0_92, %c0_93] : memref<1x1x5x2x9x8xbf16, #tpu.memory_space<vmem>>, vector<1x1x1x1x8x4xbf16>
    %37 = vector.shape_cast %36 : vector<1x1x1x1x8x4xbf16> to vector<8x4xbf16>
    %c0_94 = arith.constant 0 : index
    %c12 = arith.constant 12 : index
    %38 = vector.load %arg7[%c0_94, %c12] : memref<32x36xbf16, #tpu.memory_space<vmem>>, vector<8x4xbf16>
    tpu.vector_store %arg7[%c0_94, %c12], %37 {strides = array<i32>} : memref<32x36xbf16, #tpu.memory_space<vmem>>, vector<8x4xbf16>,
    %c0_95 = arith.constant 0 : index
    %c0_96 = arith.constant 0 : index
    %c1_97 = arith.constant 1 : index
    %c1_98 = arith.constant 1 : index
    %c0_99 = arith.constant 0 : index
    %c0_100 = arith.constant 0 : index
    %39 = vector.load %arg2[%c0_95, %c0_96, %c1_97, %c1_98, %c0_99, %c0_100] : memref<1x1x5x2x9x8xbf16, #tpu.memory_space<vmem>>, vector<1x1x1x1x8x4xbf16>
    %40 = vector.shape_cast %39 : vector<1x1x1x1x8x4xbf16> to vector<8x4xbf16>
    %c8_101 = arith.constant 8 : index
    %c12_102 = arith.constant 12 : index
    %41 = vector.load %arg7[%c8_101, %c12_102] : memref<32x36xbf16, #tpu.memory_space<vmem>>, vector<8x4xbf16>
    tpu.vector_store %arg7[%c8_101, %c12_102], %40 {strides = array<i32>} : memref<32x36xbf16, #tpu.memory_space<vmem>>, vector<8x4xbf16>,
    %c0_103 = arith.constant 0 : index
    %c0_104 = arith.constant 0 : index
    %c2_105 = arith.constant 2 : index
    %c1_106 = arith.constant 1 : index
    %c0_107 = arith.constant 0 : index
    %c0_108 = arith.constant 0 : index
    %42 = vector.load %arg2[%c0_103, %c0_104, %c2_105, %c1_106, %c0_107, %c0_108] : memref<1x1x5x2x9x8xbf16, #tpu.memory_space<vmem>>, vector<1x1x1x1x8x4xbf16>
    %43 = vector.shape_cast %42 : vector<1x1x1x1x8x4xbf16> to vector<8x4xbf16>
    %c16_109 = arith.constant 16 : index
    %c12_110 = arith.constant 12 : index
    %44 = vector.load %arg7[%c16_109, %c12_110] : memref<32x36xbf16, #tpu.memory_space<vmem>>, vector<8x4xbf16>
    tpu.vector_store %arg7[%c16_109, %c12_110], %43 {strides = array<i32>} : memref<32x36xbf16, #tpu.memory_space<vmem>>, vector<8x4xbf16>,
    %c0_111 = arith.constant 0 : index
    %c0_112 = arith.constant 0 : index
    %c3_113 = arith.constant 3 : index
    %c1_114 = arith.constant 1 : index
    %c0_115 = arith.constant 0 : index
    %c0_116 = arith.constant 0 : index
    %45 = vector.load %arg2[%c0_111, %c0_112, %c3_113, %c1_114, %c0_115, %c0_116] : memref<1x1x5x2x9x8xbf16, #tpu.memory_space<vmem>>, vector<1x1x1x1x8x4xbf16>
    %46 = vector.shape_cast %45 : vector<1x1x1x1x8x4xbf16> to vector<8x4xbf16>
    %c24_117 = arith.constant 24 : index
    %c12_118 = arith.constant 12 : index
    %47 = vector.load %arg7[%c24_117, %c12_118] : memref<32x36xbf16, #tpu.memory_space<vmem>>, vector<8x4xbf16>
    tpu.vector_store %arg7[%c24_117, %c12_118], %46 {strides = array<i32>} : memref<32x36xbf16, #tpu.memory_space<vmem>>, vector<8x4xbf16>,
    %c0_119 = arith.constant 0 : index
    %c0_120 = arith.constant 0 : index
    %c0_121 = arith.constant 0 : index
    %c1_122 = arith.constant 1 : index
    %c0_123 = arith.constant 0 : index
    %c4_124 = arith.constant 4 : index
    %48 = vector.load %arg2[%c0_119, %c0_120, %c0_121, %c1_122, %c0_123, %c4_124] : memref<1x1x5x2x9x8xbf16, #tpu.memory_space<vmem>>, vector<1x1x1x1x8x4xbf16>
    %49 = vector.shape_cast %48 : vector<1x1x1x1x8x4xbf16> to vector<8x4xbf16>
    %c0_125 = arith.constant 0 : index
    %c16_126 = arith.constant 16 : index
    %50 = vector.load %arg7[%c0_125, %c16_126] : memref<32x36xbf16, #tpu.memory_space<vmem>>, vector<8x4xbf16>
    tpu.vector_store %arg7[%c0_125, %c16_126], %49 {strides = array<i32>} : memref<32x36xbf16, #tpu.memory_space<vmem>>, vector<8x4xbf16>,
    %c0_127 = arith.constant 0 : index
    %c0_128 = arith.constant 0 : index
    %c1_129 = arith.constant 1 : index
    %c1_130 = arith.constant 1 : index
    %c0_131 = arith.constant 0 : index
    %c4_132 = arith.constant 4 : index
    %51 = vector.load %arg2[%c0_127, %c0_128, %c1_129, %c1_130, %c0_131, %c4_132] : memref<1x1x5x2x9x8xbf16, #tpu.memory_space<vmem>>, vector<1x1x1x1x8x4xbf16>
    %52 = vector.shape_cast %51 : vector<1x1x1x1x8x4xbf16> to vector<8x4xbf16>
    %c8_133 = arith.constant 8 : index
    %c16_134 = arith.constant 16 : index
    %53 = vector.load %arg7[%c8_133, %c16_134] : memref<32x36xbf16, #tpu.memory_space<vmem>>, vector<8x4xbf16>
    tpu.vector_store %arg7[%c8_133, %c16_134], %52 {strides = array<i32>} : memref<32x36xbf16, #tpu.memory_space<vmem>>, vector<8x4xbf16>,
    %c0_135 = arith.constant 0 : index
    %c0_136 = arith.constant 0 : index
    %c2_137 = arith.constant 2 : index
    %c1_138 = arith.constant 1 : index
    %c0_139 = arith.constant 0 : index
    %c4_140 = arith.constant 4 : index
    %54 = vector.load %arg2[%c0_135, %c0_136, %c2_137, %c1_138, %c0_139, %c4_140] : memref<1x1x5x2x9x8xbf16, #tpu.memory_space<vmem>>, vector<1x1x1x1x8x4xbf16>
    %55 = vector.shape_cast %54 : vector<1x1x1x1x8x4xbf16> to vector<8x4xbf16>
    %c16_141 = arith.constant 16 : index
    %c16_142 = arith.constant 16 : index
    %56 = vector.load %arg7[%c16_141, %c16_142] : memref<32x36xbf16, #tpu.memory_space<vmem>>, vector<8x4xbf16>
    tpu.vector_store %arg7[%c16_141, %c16_142], %55 {strides = array<i32>} : memref<32x36xbf16, #tpu.memory_space<vmem>>, vector<8x4xbf16>,
    %c0_143 = arith.constant 0 : index
    %c0_144 = arith.constant 0 : index
    %c3_145 = arith.constant 3 : index
    %c1_146 = arith.constant 1 : index
    %c0_147 = arith.constant 0 : index
    %c4_148 = arith.constant 4 : index
    %57 = vector.load %arg2[%c0_143, %c0_144, %c3_145, %c1_146, %c0_147, %c4_148] : memref<1x1x5x2x9x8xbf16, #tpu.memory_space<vmem>>, vector<1x1x1x1x8x4xbf16>
    %58 = vector.shape_cast %57 : vector<1x1x1x1x8x4xbf16> to vector<8x4xbf16>
    %c24_149 = arith.constant 24 : index
    %c16_150 = arith.constant 16 : index
    %59 = vector.load %arg7[%c24_149, %c16_150] : memref<32x36xbf16, #tpu.memory_space<vmem>>, vector<8x4xbf16>
    tpu.vector_store %arg7[%c24_149, %c16_150], %58 {strides = array<i32>} : memref<32x36xbf16, #tpu.memory_space<vmem>>, vector<8x4xbf16>,
    %c0_151 = arith.constant 0 : index
    %c0_152 = arith.constant 0 : index
    %c0_153 = arith.constant 0 : index
    %c1_154 = arith.constant 1 : index
    %c1_155 = arith.constant 1 : index
    %c0_156 = arith.constant 0 : index
    %60 = vector.load %arg2[%c0_151, %c0_152, %c0_153, %c1_154, %c1_155, %c0_156] : memref<1x1x5x2x9x8xbf16, #tpu.memory_space<vmem>>, vector<1x1x1x1x8x4xbf16>
    %61 = vector.shape_cast %60 : vector<1x1x1x1x8x4xbf16> to vector<8x4xbf16>
    %c0_157 = arith.constant 0 : index
    %c20 = arith.constant 20 : index
    %62 = vector.load %arg7[%c0_157, %c20] : memref<32x36xbf16, #tpu.memory_space<vmem>>, vector<8x4xbf16>
    tpu.vector_store %arg7[%c0_157, %c20], %61 {strides = array<i32>} : memref<32x36xbf16, #tpu.memory_space<vmem>>, vector<8x4xbf16>,
    %c0_158 = arith.constant 0 : index
    %c0_159 = arith.constant 0 : index
    %c1_160 = arith.constant 1 : index
    %c1_161 = arith.constant 1 : index
    %c1_162 = arith.constant 1 : index
    %c0_163 = arith.constant 0 : index
    %63 = vector.load %arg2[%c0_158, %c0_159, %c1_160, %c1_161, %c1_162, %c0_163] : memref<1x1x5x2x9x8xbf16, #tpu.memory_space<vmem>>, vector<1x1x1x1x8x4xbf16>
    %64 = vector.shape_cast %63 : vector<1x1x1x1x8x4xbf16> to vector<8x4xbf16>
    %c8_164 = arith.constant 8 : index
    %c20_165 = arith.constant 20 : index
    %65 = vector.load %arg7[%c8_164, %c20_165] : memref<32x36xbf16, #tpu.memory_space<vmem>>, vector<8x4xbf16>
    tpu.vector_store %arg7[%c8_164, %c20_165], %64 {strides = array<i32>} : memref<32x36xbf16, #tpu.memory_space<vmem>>, vector<8x4xbf16>,
    %c0_166 = arith.constant 0 : index
    %c0_167 = arith.constant 0 : index
    %c2_168 = arith.constant 2 : index
    %c1_169 = arith.constant 1 : index
    %c1_170 = arith.constant 1 : index
    %c0_171 = arith.constant 0 : index
    %66 = vector.load %arg2[%c0_166, %c0_167, %c2_168, %c1_169, %c1_170, %c0_171] : memref<1x1x5x2x9x8xbf16, #tpu.memory_space<vmem>>, vector<1x1x1x1x8x4xbf16>
    %67 = vector.shape_cast %66 : vector<1x1x1x1x8x4xbf16> to vector<8x4xbf16>
    %c16_172 = arith.constant 16 : index
    %c20_173 = arith.constant 20 : index
    %68 = vector.load %arg7[%c16_172, %c20_173] : memref<32x36xbf16, #tpu.memory_space<vmem>>, vector<8x4xbf16>
    tpu.vector_store %arg7[%c16_172, %c20_173], %67 {strides = array<i32>} : memref<32x36xbf16, #tpu.memory_space<vmem>>, vector<8x4xbf16>,
    %c0_174 = arith.constant 0 : index
    %c0_175 = arith.constant 0 : index
    %c3_176 = arith.constant 3 : index
    %c1_177 = arith.constant 1 : index
    %c1_178 = arith.constant 1 : index
    %c0_179 = arith.constant 0 : index
    %69 = vector.load %arg2[%c0_174, %c0_175, %c3_176, %c1_177, %c1_178, %c0_179] : memref<1x1x5x2x9x8xbf16, #tpu.memory_space<vmem>>, vector<1x1x1x1x8x4xbf16>
    %70 = vector.shape_cast %69 : vector<1x1x1x1x8x4xbf16> to vector<8x4xbf16>
    %c24_180 = arith.constant 24 : index
    %c20_181 = arith.constant 20 : index
    %71 = vector.load %arg7[%c24_180, %c20_181] : memref<32x36xbf16, #tpu.memory_space<vmem>>, vector<8x4xbf16>
    tpu.vector_store %arg7[%c24_180, %c20_181], %70 {strides = array<i32>} : memref<32x36xbf16, #tpu.memory_space<vmem>>, vector<8x4xbf16>,
    %c0_182 = arith.constant 0 : index
    %c0_183 = arith.constant 0 : index
    %c1_184 = arith.constant 1 : index
    %c0_185 = arith.constant 0 : index
    %c0_186 = arith.constant 0 : index
    %c0_187 = arith.constant 0 : index
    %72 = vector.load %arg2[%c0_182, %c0_183, %c1_184, %c0_185, %c0_186, %c0_187] : memref<1x1x5x2x9x8xbf16, #tpu.memory_space<vmem>>, vector<1x1x1x1x8x4xbf16>
    %73 = vector.shape_cast %72 : vector<1x1x1x1x8x4xbf16> to vector<8x4xbf16>
    %c0_188 = arith.constant 0 : index
    %c24_189 = arith.constant 24 : index
    %74 = vector.load %arg7[%c0_188, %c24_189] : memref<32x36xbf16, #tpu.memory_space<vmem>>, vector<8x4xbf16>
    tpu.vector_store %arg7[%c0_188, %c24_189], %73 {strides = array<i32>} : memref<32x36xbf16, #tpu.memory_space<vmem>>, vector<8x4xbf16>,
    %c0_190 = arith.constant 0 : index
    %c0_191 = arith.constant 0 : index
    %c2_192 = arith.constant 2 : index
    %c0_193 = arith.constant 0 : index
    %c0_194 = arith.constant 0 : index
    %c0_195 = arith.constant 0 : index
    %75 = vector.load %arg2[%c0_190, %c0_191, %c2_192, %c0_193, %c0_194, %c0_195] : memref<1x1x5x2x9x8xbf16, #tpu.memory_space<vmem>>, vector<1x1x1x1x8x4xbf16>
    %76 = vector.shape_cast %75 : vector<1x1x1x1x8x4xbf16> to vector<8x4xbf16>
    %c8_196 = arith.constant 8 : index
    %c24_197 = arith.constant 24 : index
    %77 = vector.load %arg7[%c8_196, %c24_197] : memref<32x36xbf16, #tpu.memory_space<vmem>>, vector<8x4xbf16>
    tpu.vector_store %arg7[%c8_196, %c24_197], %76 {strides = array<i32>} : memref<32x36xbf16, #tpu.memory_space<vmem>>, vector<8x4xbf16>,
    %c0_198 = arith.constant 0 : index
    %c0_199 = arith.constant 0 : index
    %c3_200 = arith.constant 3 : index
    %c0_201 = arith.constant 0 : index
    %c0_202 = arith.constant 0 : index
    %c0_203 = arith.constant 0 : index
    %78 = vector.load %arg2[%c0_198, %c0_199, %c3_200, %c0_201, %c0_202, %c0_203] : memref<1x1x5x2x9x8xbf16, #tpu.memory_space<vmem>>, vector<1x1x1x1x8x4xbf16>
    %79 = vector.shape_cast %78 : vector<1x1x1x1x8x4xbf16> to vector<8x4xbf16>
    %c16_204 = arith.constant 16 : index
    %c24_205 = arith.constant 24 : index
    %80 = vector.load %arg7[%c16_204, %c24_205] : memref<32x36xbf16, #tpu.memory_space<vmem>>, vector<8x4xbf16>
    tpu.vector_store %arg7[%c16_204, %c24_205], %79 {strides = array<i32>} : memref<32x36xbf16, #tpu.memory_space<vmem>>, vector<8x4xbf16>,
    %c0_206 = arith.constant 0 : index
    %c0_207 = arith.constant 0 : index
    %c4_208 = arith.constant 4 : index
    %c0_209 = arith.constant 0 : index
    %c0_210 = arith.constant 0 : index
    %c0_211 = arith.constant 0 : index
    %81 = vector.load %arg2[%c0_206, %c0_207, %c4_208, %c0_209, %c0_210, %c0_211] : memref<1x1x5x2x9x8xbf16, #tpu.memory_space<vmem>>, vector<1x1x1x1x8x4xbf16>
    %82 = vector.shape_cast %81 : vector<1x1x1x1x8x4xbf16> to vector<8x4xbf16>
    %c24_212 = arith.constant 24 : index
    %c24_213 = arith.constant 24 : index
    %83 = vector.load %arg7[%c24_212, %c24_213] : memref<32x36xbf16, #tpu.memory_space<vmem>>, vector<8x4xbf16>
    tpu.vector_store %arg7[%c24_212, %c24_213], %82 {strides = array<i32>} : memref<32x36xbf16, #tpu.memory_space<vmem>>, vector<8x4xbf16>,
    %c0_214 = arith.constant 0 : index
    %c0_215 = arith.constant 0 : index
    %c1_216 = arith.constant 1 : index
    %c0_217 = arith.constant 0 : index
    %c0_218 = arith.constant 0 : index
    %c4_219 = arith.constant 4 : index
    %84 = vector.load %arg2[%c0_214, %c0_215, %c1_216, %c0_217, %c0_218, %c4_219] : memref<1x1x5x2x9x8xbf16, #tpu.memory_space<vmem>>, vector<1x1x1x1x8x4xbf16>
    %85 = vector.shape_cast %84 : vector<1x1x1x1x8x4xbf16> to vector<8x4xbf16>
    %c0_220 = arith.constant 0 : index
    %c28 = arith.constant 28 : index
    %86 = vector.load %arg7[%c0_220, %c28] : memref<32x36xbf16, #tpu.memory_space<vmem>>, vector<8x4xbf16>
    tpu.vector_store %arg7[%c0_220, %c28], %85 {strides = array<i32>} : memref<32x36xbf16, #tpu.memory_space<vmem>>, vector<8x4xbf16>,
    %c0_221 = arith.constant 0 : index
    %c0_222 = arith.constant 0 : index
    %c2_223 = arith.constant 2 : index
    %c0_224 = arith.constant 0 : index
    %c0_225 = arith.constant 0 : index
    %c4_226 = arith.constant 4 : index
    %87 = vector.load %arg2[%c0_221, %c0_222, %c2_223, %c0_224, %c0_225, %c4_226] : memref<1x1x5x2x9x8xbf16, #tpu.memory_space<vmem>>, vector<1x1x1x1x8x4xbf16>
    %88 = vector.shape_cast %87 : vector<1x1x1x1x8x4xbf16> to vector<8x4xbf16>
    %c8_227 = arith.constant 8 : index
    %c28_228 = arith.constant 28 : index
    %89 = vector.load %arg7[%c8_227, %c28_228] : memref<32x36xbf16, #tpu.memory_space<vmem>>, vector<8x4xbf16>
    tpu.vector_store %arg7[%c8_227, %c28_228], %88 {strides = array<i32>} : memref<32x36xbf16, #tpu.memory_space<vmem>>, vector<8x4xbf16>,
    %c0_229 = arith.constant 0 : index
    %c0_230 = arith.constant 0 : index
    %c3_231 = arith.constant 3 : index
    %c0_232 = arith.constant 0 : index
    %c0_233 = arith.constant 0 : index
    %c4_234 = arith.constant 4 : index
    %90 = vector.load %arg2[%c0_229, %c0_230, %c3_231, %c0_232, %c0_233, %c4_234] : memref<1x1x5x2x9x8xbf16, #tpu.memory_space<vmem>>, vector<1x1x1x1x8x4xbf16>
    %91 = vector.shape_cast %90 : vector<1x1x1x1x8x4xbf16> to vector<8x4xbf16>
    %c16_235 = arith.constant 16 : index
    %c28_236 = arith.constant 28 : index
    %92 = vector.load %arg7[%c16_235, %c28_236] : memref<32x36xbf16, #tpu.memory_space<vmem>>, vector<8x4xbf16>
    tpu.vector_store %arg7[%c16_235, %c28_236], %91 {strides = array<i32>} : memref<32x36xbf16, #tpu.memory_space<vmem>>, vector<8x4xbf16>,
    %c0_237 = arith.constant 0 : index
    %c0_238 = arith.constant 0 : index
    %c4_239 = arith.constant 4 : index
    %c0_240 = arith.constant 0 : index
    %c0_241 = arith.constant 0 : index
    %c4_242 = arith.constant 4 : index
    %93 = vector.load %arg2[%c0_237, %c0_238, %c4_239, %c0_240, %c0_241, %c4_242] : memref<1x1x5x2x9x8xbf16, #tpu.memory_space<vmem>>, vector<1x1x1x1x8x4xbf16>
    %94 = vector.shape_cast %93 : vector<1x1x1x1x8x4xbf16> to vector<8x4xbf16>
    %c24_243 = arith.constant 24 : index
    %c28_244 = arith.constant 28 : index
    %95 = vector.load %arg7[%c24_243, %c28_244] : memref<32x36xbf16, #tpu.memory_space<vmem>>, vector<8x4xbf16>
    tpu.vector_store %arg7[%c24_243, %c28_244], %94 {strides = array<i32>} : memref<32x36xbf16, #tpu.memory_space<vmem>>, vector<8x4xbf16>,
    %c0_245 = arith.constant 0 : index
    %c0_246 = arith.constant 0 : index
    %c1_247 = arith.constant 1 : index
    %c0_248 = arith.constant 0 : index
    %c1_249 = arith.constant 1 : index
    %c0_250 = arith.constant 0 : index
    %96 = vector.load %arg2[%c0_245, %c0_246, %c1_247, %c0_248, %c1_249, %c0_250] : memref<1x1x5x2x9x8xbf16, #tpu.memory_space<vmem>>, vector<1x1x1x1x8x4xbf16>
    %97 = vector.shape_cast %96 : vector<1x1x1x1x8x4xbf16> to vector<8x4xbf16>
    %c0_251 = arith.constant 0 : index
    %c32 = arith.constant 32 : index
    %98 = vector.load %arg7[%c0_251, %c32] : memref<32x36xbf16, #tpu.memory_space<vmem>>, vector<8x4xbf16>
    tpu.vector_store %arg7[%c0_251, %c32], %97 {strides = array<i32>} : memref<32x36xbf16, #tpu.memory_space<vmem>>, vector<8x4xbf16>,
    %c0_252 = arith.constant 0 : index
    %c0_253 = arith.constant 0 : index
    %c2_254 = arith.constant 2 : index
    %c0_255 = arith.constant 0 : index
    %c1_256 = arith.constant 1 : index
    %c0_257 = arith.constant 0 : index
    %99 = vector.load %arg2[%c0_252, %c0_253, %c2_254, %c0_255, %c1_256, %c0_257] : memref<1x1x5x2x9x8xbf16, #tpu.memory_space<vmem>>, vector<1x1x1x1x8x4xbf16>
    %100 = vector.shape_cast %99 : vector<1x1x1x1x8x4xbf16> to vector<8x4xbf16>
    %c8_258 = arith.constant 8 : index
    %c32_259 = arith.constant 32 : index
    %101 = vector.load %arg7[%c8_258, %c32_259] : memref<32x36xbf16, #tpu.memory_space<vmem>>, vector<8x4xbf16>
    tpu.vector_store %arg7[%c8_258, %c32_259], %100 {strides = array<i32>} : memref<32x36xbf16, #tpu.memory_space<vmem>>, vector<8x4xbf16>,
    %c0_260 = arith.constant 0 : index
    %c0_261 = arith.constant 0 : index
    %c3_262 = arith.constant 3 : index
    %c0_263 = arith.constant 0 : index
    %c1_264 = arith.constant 1 : index
    %c0_265 = arith.constant 0 : index
    %102 = vector.load %arg2[%c0_260, %c0_261, %c3_262, %c0_263, %c1_264, %c0_265] : memref<1x1x5x2x9x8xbf16, #tpu.memory_space<vmem>>, vector<1x1x1x1x8x4xbf16>
    %103 = vector.shape_cast %102 : vector<1x1x1x1x8x4xbf16> to vector<8x4xbf16>
    %c16_266 = arith.constant 16 : index
    %c32_267 = arith.constant 32 : index
    %104 = vector.load %arg7[%c16_266, %c32_267] : memref<32x36xbf16, #tpu.memory_space<vmem>>, vector<8x4xbf16>
    tpu.vector_store %arg7[%c16_266, %c32_267], %103 {strides = array<i32>} : memref<32x36xbf16, #tpu.memory_space<vmem>>, vector<8x4xbf16>,
    %c0_268 = arith.constant 0 : index
    %c0_269 = arith.constant 0 : index
    %c4_270 = arith.constant 4 : index
    %c0_271 = arith.constant 0 : index
    %c1_272 = arith.constant 1 : index
    %c0_273 = arith.constant 0 : index
    %105 = vector.load %arg2[%c0_268, %c0_269, %c4_270, %c0_271, %c1_272, %c0_273] : memref<1x1x5x2x9x8xbf16, #tpu.memory_space<vmem>>, vector<1x1x1x1x8x4xbf16>
    %106 = vector.shape_cast %105 : vector<1x1x1x1x8x4xbf16> to vector<8x4xbf16>
    %c24_274 = arith.constant 24 : index
    %c32_275 = arith.constant 32 : index
    %107 = vector.load %arg7[%c24_274, %c32_275] : memref<32x36xbf16, #tpu.memory_space<vmem>>, vector<8x4xbf16>
    tpu.vector_store %arg7[%c24_274, %c32_275], %106 {strides = array<i32>} : memref<32x36xbf16, #tpu.memory_space<vmem>>, vector<8x4xbf16>,
    %c0_276 = arith.constant 0 : index
    %c0_277 = arith.constant 0 : index
    %108 = vector.load %arg7[%c0_276, %c0_277] : memref<32x36xbf16, #tpu.memory_space<vmem>>, vector<32x36xbf16>
    %c0_278 = arith.constant 0 : index
    %c0_279 = arith.constant 0 : index
    %109 = vector.load %arg3[%c0_278, %c0_279] : memref<36x8xbf16, #tpu.memory_space<vmem>>, vector<36x8xbf16>
    %cst = arith.constant dense<0.000000e+00> : vector<32x8xf32>
    %110 = tpu.matmul %108, %109, %cst {dimension_numbers = #tpu.dot_dimension_numbers<[1], [0], [0], [1], [0, 0, 1, 1], [], []>} : vector<32x36xbf16>, vector<36x8xbf16>, vector<32x8xf32> -> vector<32x8xf32>
    %c0_280 = arith.constant 0 : index
    %c0_281 = arith.constant 0 : index
    %111 = vector.load %arg4[%c0_280, %c0_281] : memref<1x8xf32, #tpu.memory_space<vmem>>, vector<1x8xf32>
    %112 = vector.broadcast %111 : vector<1x8xf32> to vector<32x8xf32>
    %113 = arith.mulf %110, %112 : vector<32x8xf32>
    %c0_282 = arith.constant 0 : index
    %c0_283 = arith.constant 0 : index
    %114 = vector.load %arg5[%c0_282, %c0_283] : memref<1x8xf32, #tpu.memory_space<vmem>>, vector<1x8xf32>
    %115 = vector.broadcast %114 : vector<1x8xf32> to vector<32x8xf32>
    %116 = arith.addf %113, %115 : vector<32x8xf32>
    %cst_284 = arith.constant 0.000000e+00 : f32
    %117 = vector.broadcast %cst_284 : f32 to vector<32x8xf32>
    %118 = arith.maximumf %116, %117 : vector<32x8xf32>
    %119 = arith.truncf %118 : vector<32x8xf32> to vector<32x8xbf16>
    %c0_285 = arith.constant 0 : index
    %c0_286 = arith.constant 0 : index
    %c0_287 = arith.constant 0 : index
    %120 = vector.load %arg6[%c0_285, %c0_286, %c0_287] : memref<1x32x8xbf16, #tpu.memory_space<vmem>>, vector<1x32x8xbf16>
    %121 = vector.shape_cast %120 : vector<1x32x8xbf16> to vector<32x8xbf16>
    %122 = vector.shape_cast %119 : vector<32x8xbf16> to vector<1x32x8xbf16>
    tpu.vector_store %arg6[%c0_285, %c0_286, %c0_287], %122 {strides = array<i32>} : memref<1x32x8xbf16, #tpu.memory_space<vmem>>, vector<1x32x8xbf16>,
    return
  }
  func.func @transform_0(%arg0: i32, %arg1: i32) -> (i32, i32, i32, i32, i32, i32) {
    %c0_i32 = arith.constant 0 : i32
    %c0_i32_0 = arith.constant 0 : i32
    %c0_i32_1 = arith.constant 0 : i32
    %c0_i32_2 = arith.constant 0 : i32
    %c0_i32_3 = arith.constant 0 : i32
    return %arg0, %arg1, %c0_i32, %c0_i32_0, %c0_i32_1, %c0_i32_2 : i32, i32, i32, i32, i32, i32
  }
  func.func @transform_1(%arg0: i32, %arg1: i32) -> (i32, i32) {
    %c0_i32 = arith.constant 0 : i32
    %c0_i32_0 = arith.constant 0 : i32
    %c0_i32_1 = arith.constant 0 : i32
    return %c0_i32, %c0_i32_0 : i32, i32
  }
  func.func @transform_2(%arg0: i32, %arg1: i32) -> (i32, i32) {
    %c0_i32 = arith.constant 0 : i32
    %c0_i32_0 = arith.constant 0 : i32
    %c0_i32_1 = arith.constant 0 : i32
    return %c0_i32, %c0_i32_0 : i32, i32
  }
  func.func @transform_3(%arg0: i32, %arg1: i32) -> (i32, i32) {
    %c0_i32 = arith.constant 0 : i32
    %c0_i32_0 = arith.constant 0 : i32
    %c0_i32_1 = arith.constant 0 : i32
    return %c0_i32, %c0_i32_0 : i32, i32
  }
  func.func @transform_4(%arg0: i32, %arg1: i32) -> (i32, i32, i32) {
    %c0_i32 = arith.constant 0 : i32
    %c0_i32_0 = arith.constant 0 : i32
    return %arg0, %arg1, %c0_i32 : i32, i32, i32
  }
}

</mosaic_0001>

<bundles_post_ra>
// kernel: tpu_custom_call.1
= control target key start
LH: loop header
LB: loop body
LE: loop exit
PB: predicated region body
PF: predicated region fallthrough
CT: control target
= control target key end

     0   :  { %s1136_s15 = smov 0   ;;  %s1138_s16 = smov 0   ;;  %s1271_s0 = inlined_call_operand.vmem [shape: bf16[2,2,5,2,9,8], index: 0, kind: input, shape index: {}]   ;;  %s1272_s1 = inlined_call_operand.vmem [shape: bf16[36,8], index: 1, kind: input, shape index: {}]   ;;  %s1273_s2 = inlined_call_operand.vmem [shape: f32[1,8], index: 2, kind: input, shape index: {}]   ;;  %s1274_s3 = inlined_call_operand.vmem [shape: f32[1,8], index: 3, kind: input, shape index: {}]   ;;  %s1275_s4 = inlined_call_operand.vmem [shape: bf16[2,64,8], index: 4, kind: output, shape index: {}]  }
   0x1   :  { %s1140_s17 = smov 0   ;;  %s1142_s18 = smov 0  }
   0x2   :  { %s1144_s19 = smov 0  }
   0x3 LB: > { %s23_s20 = sadd.s32 1, %s1096_s17  ;;  %s26_s21 = sadd.s32 1, %s1100_s18  ;;  %s1104_s19 = sphi %s1144_s19, %s14_s19   ;;  %s1100_s18 = sphi %s1142_s18, %s1279_s18   ;;  %s1096_s17 = sphi %s1140_s17, %s1278_s17   ;;  %s1092_s16 = sphi %s1138_s16, %s1277_s16   ;;  %s1088_s15 = sphi %s1136_s15, %s1276_s15  }
   0x4   : > { %p24_p0 = scmp.ge.s32.totalorder %s23_s20, 2  ;;  %p870_p1 = scmp.ge.s32.totalorder %s1104_s19, 1 }
   0x5   : > { %p182_p2 = scmp.lt.s32.totalorder %s1104_s19, 5 }
   0x6   : > { %s1281_s20 = smov (%p24_p0, %s23_s20), 0  ;;  %s1283_s21 = smov (!%p24_p0, %s26_s21), %s1100_s18 }
   0x7   : > { %p183_p3 = pnand %p870_p1, %p182_p2  ;;  %p28_p4 = scmp.ge.s32.totalorder %s1283_s21, 2 }
   0x8   : > { %p216_p5 = scmp.lt.s32.totalorder (!%p183_p3), %s1092_s16, 1  ;;  %p218_p6 = scmp.lt.s32.totalorder (!%p183_p3), %s1088_s15, 1  ;;  %vm237_vm0 = vcmask (!%p183_p3), 27648   ;;  %vm258_vm1 = vcmask (!%p183_p3), 60448   ;;  %vm245_vm2 = vcmask (!%p183_p3), 31748   ;;  %vm265_vm3 = vcmask (!%p183_p3), 64548  }
   0x9   : > { %s1285_s21 = smov (%p28_p4, %s1283_s21), 0  ;;  %186 = sbr.rel (%p183_p3) target bundleno = 425 (0x1a9), region = 36 }
   0xa   : > { %s1106_s30 = smov (!%p183_p3), 12   ;;  %s1107_s5 = smov (!%p183_p3), 8   ;;  %vm673_vm4 = vcmask (!%p183_p3), 1041408   ;;  %vm292_vm5 = vcmask (!%p183_p3), 93248   ;;  %vm359_vm6 = vcmask (!%p183_p3), 126048   ;;  %vm396_vm7 = vcmask (!%p183_p3), 158848  }
   0xb   : > { %s1108_s6 = smov (!%p183_p3), 20   ;;  %s1109_s7 = smov (!%p183_p3), 24   ;;  %vm312_vm8 = vcmask (!%p183_p3), 97348   ;;  %vm369_vm9 = vcmask (!%p183_p3), 130148   ;;  %vm405_vm10 = vcmask (!%p183_p3), 162948   ;;  %vm460_vm11 = vcmask (!%p183_p3), 195748  }
   0xc   : > { %s1110_s14 = smov (!%p183_p3), 32   ;;  %vm440_vm12 = vcmask (!%p183_p3), 191648   ;;  %vm515_vm13 = vcmask (!%p183_p3), 228548   ;;  %vm506_vm14 = vcmask (!%p183_p3), 224448   ;;  %vm550_vm15 = vcmask (!%p183_p3), 261348  }
  0x10   : > { %s1287_s16 = smov (!%p216_p5, %s1092_s16), 1 }
  0x11   : > { %s219_s22 = scalar_select %p218_p6, %s1088_s15, 1 }
  0x12   : > { %s985_s23 = smul.u32 40, %s1287_s16 }
  0x13   : > { %s984_s24 = smul.u32 20, %s219_s22  ;;  %s872_s22 = sshll.u32 %s1088_s15, 2 }
  0x14   : > { %p228_p7 = scmp.lt.s32.totalorder %s872_s22, 7 }
  0x15   : > { %s222_s25 = sadd.s32 %s985_s23, %s984_s24  ;;  %s873_s23 = sshll.u32 %s1287_s16, 3 }
  0x16   : > { %s871_s26 = sshll.u32 %s222_s25, 2  ;;  %s1289_s22 = smov (!%p228_p7, %s872_s22), 7 }
  0x17   : > { %s1176_s29 = scalar_lea.vmem %s1271_s0, %s871_s26  ;;  %s231_s26 = sadd.s32 %s873_s23, %s1289_s22 }
  0x18   : > { %v1031_v0 = vld [vmem:[%s1176_s29 + $0x18] ss:$0 sps:$4 sm:$0xff]   ;;  %v1032_v1 = vld [vmem:[%s1176_s29 + $0x8] ss:$0 sps:$4 sm:$0xff]   ;;  %v1037_v5 = vld [vmem:[%s1176_s29 + $0x20] sm:$0x1f]  }
  0x19   : > { %366 = vrot.lane.b32.xlu1 %v1031_v0, %s1106_s30  ;;  %v1033_v2 = vld [vmem:[%s1176_s29 + $0x38] ss:$0 sps:$4 sm:$0xff]   ;;  %356 = vrot.lane.b32.xlu0 %v1032_v1, %s1106_s30  ;;  %v1034_v3 = vld [vmem:[%s1176_s29 + $0x28] ss:$0 sps:$4 sm:$0xff]   ;;  %v322_v8 = vshrl.u32 %v1037_v5, 16  ;;  %v324_v9 = vshll.u32 %v1037_v5, 16 }
  0x1a   : > { %v1035_v4 = vld [vmem:[%s1176_s29 + $0x18] ss:$0 sps:$4 sm:$0xff]   ;;  %v1036_v6 = vld [vmem:[%s1176_s29 + $0x8] ss:$0 sps:$4 sm:$0xff]   ;;  %v1038_v7 = vld [vmem:[%s1176_s29] sm:$0x1f]  }
  0x1b   : > { %v283_v10 = vshrl.u32 %v1038_v7, 16  ;;  %v285_v11 = vshll.u32 %v1038_v7, 16  ;;  %v1039_v12 = vld [vmem:[%s1176_s29 + $0x30] sm:$0x1f]   ;;  %v326_v13 = vrot.slane %v324_v9, 1 }
  0x1c   : > { %v1040_v14 = vld [vmem:[%s1176_s29 + $0x10] sm:$0x1f]   ;;  %v340_v16 = vshrl.u32 %v1039_v12, 16  ;;  %v343_v17 = vshll.u32 %v1039_v12, 16  ;;  %v1043_v26 = vld [vmem:[%s1176_s29 + $0x18] sm:$0x1f]  }
  0x1d   : > { %385 = vrot.lane.b32.xlu1 %v1033_v2, %s1106_s30  ;;  %376 = vrot.lane.b32.xlu0 %v1034_v3, %s1106_s30  ;;  %v287_v15 = vrot.slane %v285_v11, 1  ;;  %v327_v18 = vor.u32 %v326_v13, %v322_v8  ;;  %v302_v19 = vshrl.u32 %v1040_v14, 16  ;;  %v305_v20 = vshll.u32 %v1040_v14, 16  ;;  %v1044_v27 = vld [vmem:[%s1176_s29 + $0x8] sm:$0x1f]   ;;  %v1063_v2 = vld [vmem:[%s1272_s1] sm:$0xff]  }
  0x1e   : > { %v342_v22 = vrot.slane %v340_v16, 4  ;;  %v345_v23 = vrot.slane %v343_v17, 5  ;;  %v450_v29 = vshrl.u32 %v1043_v26, 16  ;;  %v453_v30 = vshll.u32 %v1043_v26, 16  ;;  %v1045_v33 = vld [vmem:[%s1176_s29 + $0x38] sm:$0x1f]   ;;  %973 = vmatprep.subr.bf16.mxu0 %v1063_v2 }
  0x1f   : > { %v288_v21 = vor.u32 %v287_v15, %v283_v10  ;;  %v304_v24 = vrot.slane %v302_v19, 4  ;;  %v307_v25 = vrot.slane %v305_v20, 5  ;;  %v433_v32 = vshll.u32 %v1044_v27, 16  ;;  %v1046_v34 = vld [vmem:[%s1176_s29 + $0x28] sm:$0x1f]   ;;  %974 = vmatpush3.bf16.msra.mxu0 %v1063_v2 }
  0x20   : > { %v346_v28 = vor.u32 %v345_v23, %v342_v22  ;;  %v1041_v35 = vld [vmem:[%s1176_s29 + $0x38] ss:$0 sps:$4 sm:$0xff]   ;;  %v1042_v36 = vld [vmem:[%s1176_s29 + $0x28] ss:$0 sps:$4 sm:$0xff]   ;;  %v452_v37 = vrot.slane %v450_v29, 4  ;;  %v455_v38 = vrot.slane %v453_v30, 5 }
  0x21   : > { %402 = vrot.lane.b32.xlu1 %v1035_v4, %s1106_s30  ;;  %393 = vrot.lane.b32.xlu0 %v1036_v6, %s1106_s30  ;;  %v308_v31 = vor.u32 %v307_v25, %v304_v24  ;;  %v488_v39 = vshrl.u32 %v1045_v33, 16  ;;  %v491_v40 = vshll.u32 %v1045_v33, 16  ;;  %v431_v41 = vshrl.u32 %v1044_v27, 16  ;;  %v877_v52 = vld [vmem:[%s1176_s29 + $0x20] sm:$0xf]  ;;  %v1064_v10 = vld [vmem:[%s1272_s1 + $0x8] sm:$0xff]  }
  0x22   : > { %v435_v42 = vrot.slane %v433_v32, 1  ;;  %v472_v43 = vshll.u32 %v1046_v34, 16  ;;  %v456_v44 = vor.u32 %v455_v38, %v452_v37  ;;  %v470_v48 = vshrl.u32 %v1046_v34, 16  ;;  %v1047_v53 = vld [vmem:[%s1176_s29 + $0x20] ss:$0 sps:$4 sm:$0xff]   ;;  %975 = vmatprep.subr.bf16.mxu0 %v1064_v10 }
  0x23   : > { %v490_v45 = vrot.slane %v488_v39, 4  ;;  %v493_v46 = vrot.slane %v491_v40, 5  ;;  %249 = vst.msk [vmem:[#allocation2 + $0x8] sm:$0xf] %vm237_vm0, %v877_v52  ;;  %v882_v54 = vld [vmem:[%s1176_s29 + $0x20] sm:$0xf]  ;;  %976 = vmatpush3.bf16.msra.mxu0 %v1064_v10 }
  0x24   : > { %v436_v47 = vor.u32 %v435_v42, %v431_v41  ;;  %v474_v49 = vrot.slane %v472_v43, 1  ;;  %v236_v55 = vld [vmem:[%s1176_s29] sm:$0xf]  ;;  %v1048_v56 = vld [vmem:[%s1176_s29 + $0x10] ss:$0 sps:$4 sm:$0xff]  }
  0x25   : > { %328 = vrot.lane.b32.xlu1 %v327_v18, %s1107_s5  ;;  %289 = vrot.lane.b32.xlu0 %v288_v21, %s1107_s5  ;;  %v494_v50 = vor.u32 %v493_v46, %v490_v45  ;;  %268 = vst.msk [vmem:[#allocation2 + $0x8] sm:$0xf] %vm258_vm1, %v882_v54  ;;  %v257_v57 = vld [vmem:[%s1176_s29] sm:$0xf]  ;;  %v1059_v59 = vld [vmem:[%s1176_s29 + $0x30] ss:$0 sps:$4 sm:$0xff]  }
  0x26   : > { %v475_v51 = vor.u32 %v474_v49, %v470_v48  ;;  %238 = vst.msk [vmem:[#allocation2] sm:$0xf] %vm237_vm0, %v236_v55  ;;  %v1055_v58 = vld [vmem:[%s1176_s29 + $0x20] sm:$0x1f]   ;;  %v1060_v60 = vld [vmem:[%s1176_s29 + $0x30] ss:$0 sps:$4 sm:$0xff]  }
  0x27   : > { %259 = vst.msk [vmem:[#allocation2] sm:$0xf] %vm258_vm1, %v257_v57  ;;  %v1061_v61 = vld [vmem:[%s1176_s29 + $0x10] ss:$0 sps:$4 sm:$0xff]   ;;  %v1049_v62 = vld [vmem:[%s1176_s29 + $0x40] ss:$0 sps:$4 sm:$0xff]  }
  0x28   : > { %256 = vst.msk [vmem:[#allocation2 + $0x8] sm:$0xf0] %vm245_vm2, %v1059_v59  ;;  %v1062_v63 = vld [vmem:[%s1176_s29 + $0x10] ss:$0 sps:$4 sm:$0xff]   ;;  %246 = vst.msk [vmem:[#allocation2] sm:$0xf0] %vm245_vm2, %v1061_v61 }
  0x29   : > { %347 = vrot.lane.b32.xlu1 %v346_v28, %s1107_s5  ;;  %309 = vrot.lane.b32.xlu0 %v308_v31, %s1107_s5  ;;  %v1050_v0 = vld [vmem:[%s1176_s29 + $0x30] ss:$0 sps:$4 sm:$0xff]   ;;  %274 = vst.msk [vmem:[#allocation2 + $0x8] sm:$0xf0] %vm265_vm3, %v1060_v60  ;;  %266 = vst.msk [vmem:[#allocation2] sm:$0xf0] %vm265_vm3, %v1062_v63 }
  0x2a   : > { %v1056_v1 = vld [vmem:[%s1176_s29 + $0x10] sm:$0x1f]   ;;  %v595_v3 = vshrl.u32 %v1055_v58, 16  ;;  %v598_v4 = vshll.u32 %v1055_v58, 16  ;;  %v1051_v5 = vld [vmem:[%s1176_s29 + $0x20] ss:$0 sps:$4 sm:$0xff]  }
  0x2b   : > { %v1057_v6 = vld [vmem:[%s1176_s29 + $0x40] sm:$0x1f]   ;;  %v1052_v7 = vld [vmem:[%s1176_s29 + $0x10] ss:$0 sps:$4 sm:$0xff]   ;;  %v578_v8 = vshll.u32 %v1056_v1, 16  ;;  %v576_v18 = vshrl.u32 %v1056_v1, 16 }
  0x2c   : > { %v1058_v9 = vld [vmem:[%s1176_s29 + $0x30] sm:$0x1f]   ;;  %v1053_v11 = vld [vmem:[%s1176_s29 + $0x40] ss:$0 sps:$4 sm:$0xff]   ;;  %v597_v12 = vrot.slane %v595_v3, 4  ;;  %v600_v13 = vrot.slane %v598_v4, 5 }
  0x2d   : > { %419 = vrot.lane.b32.xlu1 %v1041_v35, %s1106_s30  ;;  %411 = vrot.lane.b32.xlu0 %v1042_v36, %s1106_s30  ;;  %v633_v14 = vshrl.u32 %v1057_v6, 16  ;;  %v636_v15 = vshll.u32 %v1057_v6, 16  ;;  %v1065_v16 = vld [vmem:[%s1272_s1 + $0x10] ss:$0 sps:$4 sm:$0x33]   ;;  %v580_v19 = vrot.slane %v578_v8, 1 }
  0x2e   : > { %v1054_v17 = vld [vmem:[%s1176_s29 + $0x30] ss:$0 sps:$4 sm:$0xff]   ;;  %v617_v20 = vshll.u32 %v1058_v9, 16  ;;  %983 = vmatprep.subr.msk.bf16.mxu0 %vm673_vm4, %v1065_v16  ;;  %v601_v21 = vor.u32 %v600_v13, %v597_v12  ;;  %v675_v24 = vsel %vm673_vm4, %v1065_v16, 0  ;;  %v615_v26 = vshrl.u32 %v1058_v9, 16  ;;  %s874_s29 = sshll.u32 %s231_s26, 2 }
  0x2f   : > { %v635_v22 = vrot.slane %v633_v14, 4  ;;  %v638_v23 = vrot.slane %v636_v15, 5  ;;  %v581_v25 = vor.u32 %v580_v19, %v576_v18  ;;  %978 = vmatpush3.bf16.msra.mxu0 %v675_v24  ;;  %vm541_vm0 = vcmask 257248   ;;  %v956_v60 = vld [vmem:[%s1273_s2] ss:$0 sm:$0xff]  ;;  %s233_s30 = scalar_lea.vmem %s1275_s4, %s874_s29 }
  0x30   : > { %v619_v27 = vrot.slane %v617_v20, 1  ;;  %vm605_vm1 = vcmask 294148   ;;  %vm585_vm2 = vcmask 290048   ;;  %vm666_vm3 = vcmask 293888  }
  0x31   : > { %457 = vrot.lane.b32.xlu1 %v456_v44, %s1108_s6  ;;  %437 = vrot.lane.b32.xlu0 %v436_v47, %s1108_s6  ;;  %v639_v28 = vor.u32 %v638_v23, %v635_v22  ;;  %vm768_vm4 = vcmask 60416  }
  0x32   : > { %v620_v29 = vor.u32 %v619_v27, %v615_v26 }
  0x35   : > { %495 = vrot.lane.b32.xlu1 %v494_v50, %s1108_s6  ;;  %476 = vrot.lane.b32.xlu0 %v475_v51, %s1108_s6 }
  0x39   : > { %512 = vrot.lane.b32.xlu1 %v1047_v53, %s1109_s7  ;;  %503 = vrot.lane.b32.xlu0 %v1048_v56, %s1109_s7 }
  0x3d   : > { %530 = vrot.lane.b32.xlu1 %v1049_v62, %s1109_s7  ;;  %521 = vrot.lane.b32.xlu0 %v1050_v0, %s1109_s7  ;;  %v957_v62 = vld [vmem:[%s1274_s3] ss:$0 sm:$0xff] }
  0x41   : > { %547 = vrot.lane.b32.xlu1 %v1051_v5, %s1109_s7  ;;  %538 = vrot.lane.b32.xlu0 %v1052_v7, %s1109_s7 }
  0x45   : > { %564 = vrot.lane.b32.xlu1 %v1053_v11, %s1109_s7  ;;  %556 = vrot.lane.b32.xlu0 %v1054_v17, %s1109_s7 }
  0x49   : > { %602 = vrot.lane.b32.xlu1 %v601_v21, %s1110_s14  ;;  %582 = vrot.lane.b32.xlu0 %v581_v25, %s1110_s14 }
  0x4d   : > { %640 = vrot.lane.b32.xlu1 %v639_v28, %s1110_s14  ;;  %621 = vrot.lane.b32.xlu0 %v620_v29, %s1110_s14 }
  0x8b   : > { %v367_v30 = vpop.permute.xlu1 %366  ;;  %v357_v31 = vpop.permute.xlu0 %356 }
  0x8f   : > { %v386_v32 = vpop.permute.xlu1 %385  ;;  %v377_v33 = vpop.permute.xlu0 %376 }
  0x93   : > { %v403_v34 = vpop.permute.xlu1 %402  ;;  %v394_v35 = vpop.permute.xlu0 %393 }
  0x97   : > { %v329_v36 = vpop.permute.xlu1 %328  ;;  %v290_v37 = vpop.permute.xlu0 %289 }
  0x98   : > { %331 = vst.msk [vmem:[#allocation2 + $0x8] sm:$0xf] %vm292_vm5, %v329_v36  ;;  %293 = vst.msk [vmem:[#allocation2] sm:$0xf] %vm292_vm5, %v290_v37 }
  0x99   : > { %379 = vst.msk [vmem:[#allocation2 + $0x8] sm:$0xf] %vm359_vm6, %v377_v33  ;;  %360 = vst.msk [vmem:[#allocation2] sm:$0xf] %vm359_vm6, %v357_v31 }
  0x9a   : > { %397 = vst.msk [vmem:[#allocation2] sm:$0xf] %vm396_vm7, %v394_v35 }
  0x9b   : > { %v348_v38 = vpop.permute.xlu1 %347  ;;  %v310_v39 = vpop.permute.xlu0 %309 }
  0x9c   : > { %350 = vst.msk [vmem:[#allocation2 + $0x8] sm:$0xf0] %vm312_vm8, %v348_v38  ;;  %313 = vst.msk [vmem:[#allocation2] sm:$0xf0] %vm312_vm8, %v310_v39 }
  0x9d   : > { %388 = vst.msk [vmem:[#allocation2 + $0x8] sm:$0xf0] %vm369_vm9, %v386_v32  ;;  %370 = vst.msk [vmem:[#allocation2] sm:$0xf0] %vm369_vm9, %v367_v30 }
  0x9e   : > { %406 = vst.msk [vmem:[#allocation2] sm:$0xf0] %vm405_vm10, %v403_v34 }
  0x9f   : > { %v420_v40 = vpop.permute.xlu1 %419  ;;  %v412_v41 = vpop.permute.xlu0 %411 }
  0xa0   : > { %422 = vst.msk [vmem:[#allocation2 + $0x8] sm:$0xf0] %vm405_vm10, %v420_v40 }
  0xa1   : > { %414 = vst.msk [vmem:[#allocation2 + $0x8] sm:$0xf] %vm396_vm7, %v412_v41 }
  0xa3   : > { %v458_v42 = vpop.permute.xlu1 %457  ;;  %v438_v43 = vpop.permute.xlu0 %437 }
  0xa4   : > { %461 = vst.msk [vmem:[#allocation2] sm:$0xf0] %vm460_vm11, %v458_v42 }
  0xa5   : > { %441 = vst.msk [vmem:[#allocation2] sm:$0xf] %vm440_vm12, %v438_v43 }
  0xa7   : > { %v496_v44 = vpop.permute.xlu1 %495  ;;  %v477_v45 = vpop.permute.xlu0 %476 }
  0xa8   : > { %498 = vst.msk [vmem:[#allocation2 + $0x8] sm:$0xf0] %vm460_vm11, %v496_v44 }
  0xa9   : > { %479 = vst.msk [vmem:[#allocation2 + $0x8] sm:$0xf] %vm440_vm12, %v477_v45 }
  0xab   : > { %v513_v46 = vpop.permute.xlu1 %512  ;;  %v504_v47 = vpop.permute.xlu0 %503 }
  0xac   : > { %516 = vst.msk [vmem:[#allocation2] sm:$0xf0] %vm515_vm13, %v513_v46 }
  0xad   : > { %507 = vst.msk [vmem:[#allocation2] sm:$0xf] %vm506_vm14, %v504_v47 }
  0xaf   : > { %v531_v48 = vpop.permute.xlu1 %530  ;;  %v522_v49 = vpop.permute.xlu0 %521 }
  0xb0   : > { %533 = vst.msk [vmem:[#allocation2 + $0x8] sm:$0xf0] %vm515_vm13, %v531_v48 }
  0xb1   : > { %524 = vst.msk [vmem:[#allocation2 + $0x8] sm:$0xf] %vm506_vm14, %v522_v49 }
  0xb3   : > { %v548_v50 = vpop.permute.xlu1 %547  ;;  %v539_v51 = vpop.permute.xlu0 %538 }
  0xb4   : > { %551 = vst.msk [vmem:[#allocation2] sm:$0xf0] %vm550_vm15, %v548_v50 }
  0xb5   : > { %542 = vst.msk [vmem:[#allocation2] sm:$0xf] %vm541_vm0, %v539_v51 }
  0xb7   : > { %v565_v52 = vpop.permute.xlu1 %564  ;;  %v557_v53 = vpop.permute.xlu0 %556 }
  0xb8   : > { %567 = vst.msk [vmem:[#allocation2 + $0x8] sm:$0xf0] %vm550_vm15, %v565_v52 }
  0xb9   : > { %559 = vst.msk [vmem:[#allocation2 + $0x8] sm:$0xf] %vm541_vm0, %v557_v53 }
  0xbb   : > { %v603_v54 = vpop.permute.xlu1 %602  ;;  %v583_v55 = vpop.permute.xlu0 %582 }
  0xbc   : > { %606 = vst.msk [vmem:[#allocation2] sm:$0xf0] %vm605_vm1, %v603_v54 }
  0xbd   : > { %586 = vst.msk [vmem:[#allocation2] sm:$0xf] %vm585_vm2, %v583_v55 }
  0xbf   : > { %v641_v56 = vpop.permute.xlu1 %640  ;;  %v622_v57 = vpop.permute.xlu0 %621 }
  0xc0   : > { %643 = vst.msk [vmem:[#allocation2 + $0x8] sm:$0xf0] %vm605_vm1, %v641_v56 }
  0xc1   : > { %624 = vst.msk [vmem:[#allocation2 + $0x8] sm:$0xf] %vm585_vm2, %v622_v57 }
  0xc4   : > { %v644_v58 = vld [vmem:[#allocation2] sm:$0xff] }
  0xc5   : > { %979 = vmatprep.mubr.msk.bf16.mxu0 %vm666_vm3, %v644_v58 }
  0xc8   : > { %v645_v59 = vld [vmem:[#allocation2 + $0x8] sm:$0xff] }
  0xc9   : > { %980 = vmatmul.mubr.msk.bf16.vlgmr.msra.gmra.mrb[0].mxu0 %vm666_vm3, %v645_v59 }
 0x19c   : > { %v981_v61 = vpop.f32.mrb[0].mxu0 }
 0x19d   : > { %v735_v63 = vmul.f32 %v981_v61, %v956_v60  ;;  %v711_v0 = vpop.f32.mrb[1].mxu0 }
 0x19e   : > { %v733_v1 = vmul.f32 %v956_v60, %v711_v0  ;;  %v982_v2 = vpop.f32.mrb[2].mxu0 }
 0x19f   : > { %v746_v3 = vadd.f32 %v957_v62, %v735_v63  ;;  %v736_v4 = vmul.f32 %v982_v2, %v956_v60  ;;  %v714_v5 = vpop.f32.mrb[3].mxu0 }
 0x1a0   : > { %v744_v6 = vadd.f32 %v957_v62, %v733_v1  ;;  %v734_v7 = vmul.f32 %v956_v60, %v714_v5 }
 0x1a1   : > { %v750_v8 = vmax.f32 %v746_v3, 0.0  ;;  %v747_v9 = vadd.f32 %v957_v62, %v736_v4 }
 0x1a2   : > { %v748_v10 = vmax.f32 %v744_v6, 0.0  ;;  %v745_v11 = vadd.f32 %v957_v62, %v734_v7 }
 0x1a3   : > { %v966_v12 = vpack.c.bf16 %v750_v8, %v750_v8  ;;  %v751_v13 = vmax.f32 %v747_v9, 0.0 }
 0x1a4   : > { %v964_v14 = vpack.c.bf16 %v748_v10, %v748_v10  ;;  %v749_v15 = vmax.f32 %v745_v11, 0.0 }
 0x1a5   : > { %771 = vst.msk [vmem:[%s233_s30 + $0x8] sm:$0xf] %vm768_vm4, %v966_v12  ;;  %v967_v16 = vpack.c.bf16 %v751_v13, %v751_v13 }
 0x1a6   : > { %769 = vst.msk [vmem:[%s233_s30] sm:$0xf] %vm768_vm4, %v964_v14  ;;  %v965_v17 = vpack.c.bf16 %v749_v15, %v749_v15 }
 0x1a7   : > { %772 = vst.msk [vmem:[%s233_s30 + $0xc] sm:$0xf] %vm768_vm4, %v967_v16 }
 0x1a8   : > { %770 = vst.msk [vmem:[%s233_s30 + $0x4] sm:$0xf] %vm768_vm4, %v965_v17 }
 0x1a9 PF: > { %s14_s19 = sadd.s32 1, %s1104_s19   ;;  %s1276_s15 = smov %s1096_s17 }
 0x1aa   : > { %p11_p8 = scmp.ge.s32.totalorder %s14_s19, 6   ;;  %s1277_s16 = smov %s1100_s18 }
 0x1ab   : > { %s1278_s17 = smov %s1281_s20  ;;  %s1279_s18 = smov %s1285_s21 }
 0x1ac   :  { %13 = sbr.rel (!%p11_p8) target bundleno = 3 (0x3), region = 74 }

</bundles_post_ra>
